<compile_context>
chip_gen: v5e
topology: v5e:2x2
jax: 0.10.0
libtpu: 0.0.40
codegen_flags: <defaults>
</compile_context>

<pallas_src>
import functools

import jax
import jax.numpy as jnp
from jax import lax
from jax.experimental import pallas as pl
from jax.experimental.pallas import tpu as pltpu

block_size = 32
n_embd = 64


def _mha_kernel(x_ref, wqkv_ref, wproj_ref, bproj_ref, o_ref,
                *, num_heads, head_size, scale):
    T = x_ref.shape[1]
    H, hs = num_heads, head_size
    Hhs = H * hs

    x = x_ref[0]                                   # (T, C) bf16

    # Fused Q/K/V projection for all heads: one (T, C) @ (C, 3*H*hs) matmul.
    qkv = jnp.dot(x, wqkv_ref[...],
                  preferred_element_type=jnp.float32)        # (T, 3*Hhs) f32

    # Causal mask generated in-kernel (additive, NaN-robust).
    row = lax.broadcasted_iota(jnp.int32, (T, T), 0)
    col = lax.broadcasted_iota(jnp.int32, (T, T), 1)
    neg_mask = jnp.where(row >= col, jnp.float32(0.0), jnp.float32(-1e30))

    head_outs = []
    for h in range(H):                              # static unroll, H is small
        q = qkv[:, h * hs:(h + 1) * hs].astype(jnp.bfloat16)
        k = qkv[:, Hhs + h * hs:Hhs + (h + 1) * hs].astype(jnp.bfloat16)
        v = qkv[:, 2 * Hhs + h * hs:2 * Hhs + (h + 1) * hs].astype(jnp.bfloat16)

        # scores: contract q dim 1 with k dim 1 (no explicit k.T transpose).
        # NOTE: scale is C**-0.5 (n_embd), matching the reference module.
        s = lax.dot_general(q, k, (((1,), (1,)), ((), ())),
                            preferred_element_type=jnp.float32)   # (T, T) f32
        s = s * scale + neg_mask

        # softmax in f32; divide via EUP reciprocal (separate VLIW slot).
        m = jnp.max(s, axis=-1, keepdims=True)
        p = jnp.exp(s - m)
        denom = jnp.sum(p, axis=-1, keepdims=True)
        p = p * pl.reciprocal(denom, approx=True)

        head_outs.append(
            jnp.dot(p.astype(jnp.bfloat16), v,
                    preferred_element_type=jnp.float32))          # (T, hs) f32

    # "concat" of head outputs, then ONE fused output projection + bias.
    cat = jnp.concatenate(head_outs, axis=-1)                     # (T, Hhs) f32
    y = jnp.dot(cat.astype(jnp.bfloat16), wproj_ref[...],
                preferred_element_type=jnp.float32)               # (T, C) f32
    o_ref[0] = y + bproj_ref[...]                                 # bias once


def multi_head_attention(x, wq, wk, wv, wp, bp):
    """x: (B, T, C); wq/wk/wv: (H, C, hs); wp: (H, hs, C); bp: (1, C)."""
    B, T, C = x.shape
    H, _, hs = wq.shape
    scale = float(C) ** -0.5     # reference scales by n_embd, not head_size

    # Pack per-head weights into fused matrices (done once, wrapper-side):
    #   w_qkv[:, 0:Hhs]        = concat_h wq[h]   (so qkv[:, h*hs:(h+1)*hs] = x @ wq[h])
    #   w_qkv[:, Hhs:2Hhs]     = concat_h wk[h]
    #   w_qkv[:, 2Hhs:3Hhs]    = concat_h wv[h]
    #   w_proj (H*hs, C)       = stack_h wp[h]    (so cat @ w_proj = sum_h out_h @ wp[h])
    w_qkv = jnp.concatenate([
        jnp.transpose(wq, (1, 0, 2)).reshape(C, H * hs),
        jnp.transpose(wk, (1, 0, 2)).reshape(C, H * hs),
        jnp.transpose(wv, (1, 0, 2)).reshape(C, H * hs)], axis=-1)   # (C, 3*H*hs)
    w_proj = wp.reshape(H * hs, C)

    # bf16 MXU operands; accumulation / softmax / bias stay f32 in-kernel.
    x_bf = x.astype(jnp.bfloat16)
    w_qkv = w_qkv.astype(jnp.bfloat16)
    w_proj = w_proj.astype(jnp.bfloat16)
    bp = bp.astype(jnp.float32).reshape(1, C)

    kernel = functools.partial(_mha_kernel, num_heads=H, head_size=hs,
                               scale=scale)

    return pl.pallas_call(
        kernel,
        out_shape=jax.ShapeDtypeStruct((B, T, C), jnp.float32),
        grid_spec=pl.GridSpec(
            grid=(B,),
            in_specs=[
                pl.BlockSpec((1, T, C), lambda b: (b, 0, 0)),        # x
                pl.BlockSpec((C, 3 * H * hs), lambda b: (0, 0)),     # fused Wqkv
                pl.BlockSpec((H * hs, C), lambda b: (0, 0)),         # fused Wproj
                pl.BlockSpec((1, C), lambda b: (0, 0)),              # proj bias
            ],
            out_specs=pl.BlockSpec((1, T, C), lambda b: (b, 0, 0)),
        ),
        compiler_params=pltpu.CompilerParams(
            dimension_semantics=("parallel",)),
    )(x_bf, w_qkv, w_proj, bp)


def reference(x, wq, wk, wv, wp, bp, tril):
    """Pure-JAX f32 reference mirroring the PyTorch forward."""
    B, T, C = x.shape
    H = wq.shape[0]
    outs = []
    for h in range(H):
        q = x @ wq[h]
        k = x @ wk[h]
        v = x @ wv[h]
        s = jnp.einsum("btd,bsd->bts", q, k) * (C ** -0.5)
        s = jnp.where(tril == 0.0, -jnp.inf, s)
        p = jax.nn.softmax(s, axis=-1)
        outs.append(jnp.einsum("bts,bsd->btd", p, v))
    cat = jnp.concatenate(outs, axis=-1)                          # (B, T, H*hs)
    w_proj = jnp.concatenate([wp[h] for h in range(H)], axis=0)   # (H*hs, C)
    return cat @ w_proj + bp


if __name__ == "__main__":
    # Small shapes consistent with the module: num_heads * head_size == n_embd,
    # T <= block_size.
    B, T, C = 2, 8, n_embd
    num_heads, head_size = 4, 16

    key = jax.random.PRNGKey(0)
    kx, kq, kk, kv, kp, kb = jax.random.split(key, 6)

    x = jax.random.normal(kx, (B, T, C), dtype=jnp.float32)

    # Deterministic synthetic parameters (no checkpoint load).
    wq = 0.02 * jax.random.normal(kq, (num_heads, C, head_size), jnp.float32)
    wk = 0.02 * jax.random.normal(kk, (num_heads, C, head_size), jnp.float32)
    wv = 0.02 * jax.random.normal(kv, (num_heads, C, head_size), jnp.float32)
    wp = 0.02 * jax.random.normal(kp, (num_heads, head_size, C), jnp.float32)
    bp = 0.02 * jax.random.normal(kb, (1, C), jnp.float32)

    tril = jnp.tril(jnp.ones((T, T), dtype=jnp.float32))

    out = multi_head_attention(x, wq, wk, wv, wp, bp)
    out = jax.block_until_ready(out)

    ref = reference(x, wq, wk, wv, wp, bp, tril)
    assert out.shape == (B, T, C)
    # Tolerance accounts for bf16 MXU operands + approx EUP reciprocal
    # (f32 accumulation); observed error is well below this bound.
    assert jnp.allclose(out, ref, atol=5e-3, rtol=5e-2), (
        float(jnp.max(jnp.abs(out - ref))))

    print("KERNEL_OK")
</pallas_src>

<mosaic_0001>
module attributes {stable_mosaic.version = 11 : i64} {
  func.func @_mha_kernel(%arg0: i32, %arg1: memref<1x8x64xbf16, #tpu.memory_space<vmem>>, %arg2: memref<64x192xbf16, #tpu.memory_space<vmem>>, %arg3: memref<64x64xbf16, #tpu.memory_space<vmem>>, %arg4: memref<1x64xf32, #tpu.memory_space<vmem>>, %arg5: memref<1x8x64xf32, #tpu.memory_space<vmem>>) attributes {dimension_semantics = [#tpu.dimension_semantics<parallel>], iteration_bounds = array<i64: 2>, scalar_prefetch = 0 : i64, scratch_operands = 0 : i64, tpu.core_type = #tpu.core_type<tc>, window_params = [{transform_indices = @transform_0, window_bounds = array<i64: 1, 8, 64>}, {pipeline_mode = #tpu.pipeline_mode<synchronous>, transform_indices = @transform_1, window_bounds = array<i64: 64, 192>}, {pipeline_mode = #tpu.pipeline_mode<synchronous>, transform_indices = @transform_2, window_bounds = array<i64: 64, 64>}, {pipeline_mode = #tpu.pipeline_mode<synchronous>, transform_indices = @transform_3, window_bounds = array<i64: 1, 64>}, {transform_indices = @transform_4, window_bounds = array<i64: 1, 8, 64>}]} {
    %c0 = arith.constant 0 : index
    %c0_0 = arith.constant 0 : index
    %c0_1 = arith.constant 0 : index
    %0 = vector.load %arg1[%c0, %c0_0, %c0_1] : memref<1x8x64xbf16, #tpu.memory_space<vmem>>, vector<1x8x64xbf16>
    %1 = vector.shape_cast %0 : vector<1x8x64xbf16> to vector<8x64xbf16>
    %c0_2 = arith.constant 0 : index
    %c0_3 = arith.constant 0 : index
    %2 = vector.load %arg2[%c0_2, %c0_3] : memref<64x192xbf16, #tpu.memory_space<vmem>>, vector<64x192xbf16>
    %cst = arith.constant dense<0.000000e+00> : vector<8x192xf32>
    %3 = tpu.matmul %1, %2, %cst {dimension_numbers = #tpu.dot_dimension_numbers<[1], [0], [0], [1], [0, 0, 1, 1], [], []>} : vector<8x64xbf16>, vector<64x192xbf16>, vector<8x192xf32> -> vector<8x192xf32>
    %4 = tpu.iota {dimensions = array<i32: 0>} : vector<8x8xi32>
    %5 = tpu.iota {dimensions = array<i32: 1>} : vector<8x8xi32>
    %6 = arith.cmpi sge, %4, %5 : vector<8x8xi32>
    %cst_4 = arith.constant 0.000000e+00 : f32
    %cst_5 = arith.constant -1.000000e+30 : f32
    %7 = vector.broadcast %cst_4 : f32 to vector<8x8xf32>
    %8 = vector.broadcast %cst_5 : f32 to vector<8x8xf32>
    %9 = arith.select %6, %7, %8 : vector<8x8xi1>, vector<8x8xf32>
    %10 = vector.extract_strided_slice %3 {offsets = [0, 0], sizes = [8, 16], strides = [1, 1]} : vector<8x192xf32> to vector<8x16xf32>
    %11 = arith.truncf %10 : vector<8x16xf32> to vector<8x16xbf16>
    %12 = vector.extract_strided_slice %3 {offsets = [0, 64], sizes = [8, 16], strides = [1, 1]} : vector<8x192xf32> to vector<8x16xf32>
    %13 = arith.truncf %12 : vector<8x16xf32> to vector<8x16xbf16>
    %14 = vector.extract_strided_slice %3 {offsets = [0, 128], sizes = [8, 16], strides = [1, 1]} : vector<8x192xf32> to vector<8x16xf32>
    %15 = arith.truncf %14 : vector<8x16xf32> to vector<8x16xbf16>
    %cst_6 = arith.constant dense<0.000000e+00> : vector<8x8xf32>
    %16 = tpu.matmul %11, %13, %cst_6 {dimension_numbers = #tpu.dot_dimension_numbers<[1], [1], [0], [0], [0, 0, 1, 0], [], []>} : vector<8x16xbf16>, vector<8x16xbf16>, vector<8x8xf32> -> vector<8x8xf32>
    %cst_7 = arith.constant 1.250000e-01 : f32
    %17 = vector.broadcast %cst_7 : f32 to vector<8x8xf32>
    %18 = arith.mulf %16, %17 : vector<8x8xf32>
    %19 = arith.addf %18, %9 : vector<8x8xf32>
    %cst_8 = arith.constant dense<0xFF800000> : vector<8xf32>
    %20 = vector.multi_reduction <maximumf>, %19, %cst_8 [1] : vector<8x8xf32> to vector<8xf32>
    %21 = vector.shape_cast %20 : vector<8xf32> to vector<8x1xf32>
    %22 = vector.broadcast %21 : vector<8x1xf32> to vector<8x8xf32>
    %23 = arith.subf %19, %22 : vector<8x8xf32>
    %24 = math.exp %23 : vector<8x8xf32>
    %cst_9 = arith.constant dense<0.000000e+00> : vector<8xf32>
    %25 = vector.multi_reduction <add>, %24, %cst_9 [1] : vector<8x8xf32> to vector<8xf32>
    %26 = vector.shape_cast %25 : vector<8xf32> to vector<8x1xf32>
    %27 = tpu.reciprocal %26 {approx = true} : vector<8x1xf32> -> vector<8x1xf32>
    %28 = vector.broadcast %27 : vector<8x1xf32> to vector<8x8xf32>
    %29 = arith.mulf %24, %28 : vector<8x8xf32>
    %30 = arith.truncf %29 : vector<8x8xf32> to vector<8x8xbf16>
    %cst_10 = arith.constant dense<0.000000e+00> : vector<8x16xf32>
    %31 = tpu.matmul %30, %15, %cst_10 {dimension_numbers = #tpu.dot_dimension_numbers<[1], [0], [0], [1], [0, 0, 1, 1], [], []>} : vector<8x8xbf16>, vector<8x16xbf16>, vector<8x16xf32> -> vector<8x16xf32>
    %32 = vector.extract_strided_slice %3 {offsets = [0, 16], sizes = [8, 16], strides = [1, 1]} : vector<8x192xf32> to vector<8x16xf32>
    %33 = arith.truncf %32 : vector<8x16xf32> to vector<8x16xbf16>
    %34 = vector.extract_strided_slice %3 {offsets = [0, 80], sizes = [8, 16], strides = [1, 1]} : vector<8x192xf32> to vector<8x16xf32>
    %35 = arith.truncf %34 : vector<8x16xf32> to vector<8x16xbf16>
    %36 = vector.extract_strided_slice %3 {offsets = [0, 144], sizes = [8, 16], strides = [1, 1]} : vector<8x192xf32> to vector<8x16xf32>
    %37 = arith.truncf %36 : vector<8x16xf32> to vector<8x16xbf16>
    %cst_11 = arith.constant dense<0.000000e+00> : vector<8x8xf32>
    %38 = tpu.matmul %33, %35, %cst_11 {dimension_numbers = #tpu.dot_dimension_numbers<[1], [1], [0], [0], [0, 0, 1, 0], [], []>} : vector<8x16xbf16>, vector<8x16xbf16>, vector<8x8xf32> -> vector<8x8xf32>
    %cst_12 = arith.constant 1.250000e-01 : f32
    %39 = vector.broadcast %cst_12 : f32 to vector<8x8xf32>
    %40 = arith.mulf %38, %39 : vector<8x8xf32>
    %41 = arith.addf %40, %9 : vector<8x8xf32>
    %cst_13 = arith.constant dense<0xFF800000> : vector<8xf32>
    %42 = vector.multi_reduction <maximumf>, %41, %cst_13 [1] : vector<8x8xf32> to vector<8xf32>
    %43 = vector.shape_cast %42 : vector<8xf32> to vector<8x1xf32>
    %44 = vector.broadcast %43 : vector<8x1xf32> to vector<8x8xf32>
    %45 = arith.subf %41, %44 : vector<8x8xf32>
    %46 = math.exp %45 : vector<8x8xf32>
    %cst_14 = arith.constant dense<0.000000e+00> : vector<8xf32>
    %47 = vector.multi_reduction <add>, %46, %cst_14 [1] : vector<8x8xf32> to vector<8xf32>
    %48 = vector.shape_cast %47 : vector<8xf32> to vector<8x1xf32>
    %49 = tpu.reciprocal %48 {approx = true} : vector<8x1xf32> -> vector<8x1xf32>
    %50 = vector.broadcast %49 : vector<8x1xf32> to vector<8x8xf32>
    %51 = arith.mulf %46, %50 : vector<8x8xf32>
    %52 = arith.truncf %51 : vector<8x8xf32> to vector<8x8xbf16>
    %cst_15 = arith.constant dense<0.000000e+00> : vector<8x16xf32>
    %53 = tpu.matmul %52, %37, %cst_15 {dimension_numbers = #tpu.dot_dimension_numbers<[1], [0], [0], [1], [0, 0, 1, 1], [], []>} : vector<8x8xbf16>, vector<8x16xbf16>, vector<8x16xf32> -> vector<8x16xf32>
    %54 = vector.extract_strided_slice %3 {offsets = [0, 32], sizes = [8, 16], strides = [1, 1]} : vector<8x192xf32> to vector<8x16xf32>
    %55 = arith.truncf %54 : vector<8x16xf32> to vector<8x16xbf16>
    %56 = vector.extract_strided_slice %3 {offsets = [0, 96], sizes = [8, 16], strides = [1, 1]} : vector<8x192xf32> to vector<8x16xf32>
    %57 = arith.truncf %56 : vector<8x16xf32> to vector<8x16xbf16>
    %58 = vector.extract_strided_slice %3 {offsets = [0, 160], sizes = [8, 16], strides = [1, 1]} : vector<8x192xf32> to vector<8x16xf32>
    %59 = arith.truncf %58 : vector<8x16xf32> to vector<8x16xbf16>
    %cst_16 = arith.constant dense<0.000000e+00> : vector<8x8xf32>
    %60 = tpu.matmul %55, %57, %cst_16 {dimension_numbers = #tpu.dot_dimension_numbers<[1], [1], [0], [0], [0, 0, 1, 0], [], []>} : vector<8x16xbf16>, vector<8x16xbf16>, vector<8x8xf32> -> vector<8x8xf32>
    %cst_17 = arith.constant 1.250000e-01 : f32
    %61 = vector.broadcast %cst_17 : f32 to vector<8x8xf32>
    %62 = arith.mulf %60, %61 : vector<8x8xf32>
    %63 = arith.addf %62, %9 : vector<8x8xf32>
    %cst_18 = arith.constant dense<0xFF800000> : vector<8xf32>
    %64 = vector.multi_reduction <maximumf>, %63, %cst_18 [1] : vector<8x8xf32> to vector<8xf32>
    %65 = vector.shape_cast %64 : vector<8xf32> to vector<8x1xf32>
    %66 = vector.broadcast %65 : vector<8x1xf32> to vector<8x8xf32>
    %67 = arith.subf %63, %66 : vector<8x8xf32>
    %68 = math.exp %67 : vector<8x8xf32>
    %cst_19 = arith.constant dense<0.000000e+00> : vector<8xf32>
    %69 = vector.multi_reduction <add>, %68, %cst_19 [1] : vector<8x8xf32> to vector<8xf32>
    %70 = vector.shape_cast %69 : vector<8xf32> to vector<8x1xf32>
    %71 = tpu.reciprocal %70 {approx = true} : vector<8x1xf32> -> vector<8x1xf32>
    %72 = vector.broadcast %71 : vector<8x1xf32> to vector<8x8xf32>
    %73 = arith.mulf %68, %72 : vector<8x8xf32>
    %74 = arith.truncf %73 : vector<8x8xf32> to vector<8x8xbf16>
    %cst_20 = arith.constant dense<0.000000e+00> : vector<8x16xf32>
    %75 = tpu.matmul %74, %59, %cst_20 {dimension_numbers = #tpu.dot_dimension_numbers<[1], [0], [0], [1], [0, 0, 1, 1], [], []>} : vector<8x8xbf16>, vector<8x16xbf16>, vector<8x16xf32> -> vector<8x16xf32>
    %76 = vector.extract_strided_slice %3 {offsets = [0, 48], sizes = [8, 16], strides = [1, 1]} : vector<8x192xf32> to vector<8x16xf32>
    %77 = arith.truncf %76 : vector<8x16xf32> to vector<8x16xbf16>
    %78 = vector.extract_strided_slice %3 {offsets = [0, 112], sizes = [8, 16], strides = [1, 1]} : vector<8x192xf32> to vector<8x16xf32>
    %79 = arith.truncf %78 : vector<8x16xf32> to vector<8x16xbf16>
    %80 = vector.extract_strided_slice %3 {offsets = [0, 176], sizes = [8, 16], strides = [1, 1]} : vector<8x192xf32> to vector<8x16xf32>
    %81 = arith.truncf %80 : vector<8x16xf32> to vector<8x16xbf16>
    %cst_21 = arith.constant dense<0.000000e+00> : vector<8x8xf32>
    %82 = tpu.matmul %77, %79, %cst_21 {dimension_numbers = #tpu.dot_dimension_numbers<[1], [1], [0], [0], [0, 0, 1, 0], [], []>} : vector<8x16xbf16>, vector<8x16xbf16>, vector<8x8xf32> -> vector<8x8xf32>
    %cst_22 = arith.constant 1.250000e-01 : f32
    %83 = vector.broadcast %cst_22 : f32 to vector<8x8xf32>
    %84 = arith.mulf %82, %83 : vector<8x8xf32>
    %85 = arith.addf %84, %9 : vector<8x8xf32>
    %cst_23 = arith.constant dense<0xFF800000> : vector<8xf32>
    %86 = vector.multi_reduction <maximumf>, %85, %cst_23 [1] : vector<8x8xf32> to vector<8xf32>
    %87 = vector.shape_cast %86 : vector<8xf32> to vector<8x1xf32>
    %88 = vector.broadcast %87 : vector<8x1xf32> to vector<8x8xf32>
    %89 = arith.subf %85, %88 : vector<8x8xf32>
    %90 = math.exp %89 : vector<8x8xf32>
    %cst_24 = arith.constant dense<0.000000e+00> : vector<8xf32>
    %91 = vector.multi_reduction <add>, %90, %cst_24 [1] : vector<8x8xf32> to vector<8xf32>
    %92 = vector.shape_cast %91 : vector<8xf32> to vector<8x1xf32>
    %93 = tpu.reciprocal %92 {approx = true} : vector<8x1xf32> -> vector<8x1xf32>
    %94 = vector.broadcast %93 : vector<8x1xf32> to vector<8x8xf32>
    %95 = arith.mulf %90, %94 : vector<8x8xf32>
    %96 = arith.truncf %95 : vector<8x8xf32> to vector<8x8xbf16>
    %cst_25 = arith.constant dense<0.000000e+00> : vector<8x16xf32>
    %97 = tpu.matmul %96, %81, %cst_25 {dimension_numbers = #tpu.dot_dimension_numbers<[1], [0], [0], [1], [0, 0, 1, 1], [], []>} : vector<8x8xbf16>, vector<8x16xbf16>, vector<8x16xf32> -> vector<8x16xf32>
    %98 = tpu.concatenate %31, %53, %75, %97 in 1 : vector<8x16xf32>, vector<8x16xf32>, vector<8x16xf32>, vector<8x16xf32> -> vector<8x64xf32>
    %99 = arith.truncf %98 : vector<8x64xf32> to vector<8x64xbf16>
    %c0_26 = arith.constant 0 : index
    %c0_27 = arith.constant 0 : index
    %100 = vector.load %arg3[%c0_26, %c0_27] : memref<64x64xbf16, #tpu.memory_space<vmem>>, vector<64x64xbf16>
    %cst_28 = arith.constant dense<0.000000e+00> : vector<8x64xf32>
    %101 = tpu.matmul %99, %100, %cst_28 {dimension_numbers = #tpu.dot_dimension_numbers<[1], [0], [0], [1], [0, 0, 1, 1], [], []>} : vector<8x64xbf16>, vector<64x64xbf16>, vector<8x64xf32> -> vector<8x64xf32>
    %c0_29 = arith.constant 0 : index
    %c0_30 = arith.constant 0 : index
    %102 = vector.load %arg4[%c0_29, %c0_30] : memref<1x64xf32, #tpu.memory_space<vmem>>, vector<1x64xf32>
    %103 = vector.broadcast %102 : vector<1x64xf32> to vector<8x64xf32>
    %104 = arith.addf %101, %103 : vector<8x64xf32>
    %c0_31 = arith.constant 0 : index
    %c0_32 = arith.constant 0 : index
    %c0_33 = arith.constant 0 : index
    %105 = vector.load %arg5[%c0_31, %c0_32, %c0_33] : memref<1x8x64xf32, #tpu.memory_space<vmem>>, vector<1x8x64xf32>
    %106 = vector.shape_cast %105 : vector<1x8x64xf32> to vector<8x64xf32>
    %107 = vector.shape_cast %104 : vector<8x64xf32> to vector<1x8x64xf32>
    tpu.vector_store %arg5[%c0_31, %c0_32, %c0_33], %107 {strides = array<i32>} : memref<1x8x64xf32, #tpu.memory_space<vmem>>, vector<1x8x64xf32>,
    return
  }
  func.func @transform_0(%arg0: i32) -> (i32, i32, i32) {
    %c0_i32 = arith.constant 0 : i32
    %c0_i32_0 = arith.constant 0 : i32
    %c0_i32_1 = arith.constant 0 : i32
    return %arg0, %c0_i32, %c0_i32_0 : i32, i32, i32
  }
  func.func @transform_1(%arg0: i32) -> (i32, i32) {
    %c0_i32 = arith.constant 0 : i32
    %c0_i32_0 = arith.constant 0 : i32
    %c0_i32_1 = arith.constant 0 : i32
    return %c0_i32, %c0_i32_0 : i32, i32
  }
  func.func @transform_2(%arg0: i32) -> (i32, i32) {
    %c0_i32 = arith.constant 0 : i32
    %c0_i32_0 = arith.constant 0 : i32
    %c0_i32_1 = arith.constant 0 : i32
    return %c0_i32, %c0_i32_0 : i32, i32
  }
  func.func @transform_3(%arg0: i32) -> (i32, i32) {
    %c0_i32 = arith.constant 0 : i32
    %c0_i32_0 = arith.constant 0 : i32
    %c0_i32_1 = arith.constant 0 : i32
    return %c0_i32, %c0_i32_0 : i32, i32
  }
  func.func @transform_4(%arg0: i32) -> (i32, i32, i32) {
    %c0_i32 = arith.constant 0 : i32
    %c0_i32_0 = arith.constant 0 : i32
    %c0_i32_1 = arith.constant 0 : i32
    return %arg0, %c0_i32, %c0_i32_0 : i32, i32, i32
  }
}

</mosaic_0001>

<bundles_post_ra>
// kernel: tpu_custom_call.1
= control target key start
LH: loop header
LB: loop body
LE: loop exit
PB: predicated region body
PF: predicated region fallthrough
CT: control target
= control target key end

     0   :  { %9 = vsyncpa [#allocation3], 0  ;;  %s1345_s0 = inlined_call_operand.hbm [shape: bf16[2,8,64], index: 0, kind: input, shape index: {}]   ;;  %s1346_s1 = inlined_call_operand.hbm [shape: bf16[64,192], index: 1, kind: input, shape index: {}]   ;;  %s1347_s2 = inlined_call_operand.hbm [shape: bf16[64,64], index: 2, kind: input, shape index: {}]   ;;  %s1348_s3 = inlined_call_operand.vmem [shape: f32[1,64], index: 3, kind: input, shape index: {}]   ;;  %s1349_s4 = inlined_call_operand.hbm [shape: f32[2,8,64], index: 4, kind: output, shape index: {}]  }
   0x1   :  { %11 = vsyncpa [#allocation3 + $0x1], 0 }
   0x2   :  { %12 = vsyncpa [#allocation6], 0 }
   0x3   :  { %13 = vsyncpa [#allocation4], 0 }
   0x4   :  { %15 = vsyncpa [#allocation4 + $0x1], 0  ;;  %s1129_s15 = smov 0   ;;  %s1131_s16 = smov 0  }
   0x5   :  { %s1133_s17 = smov 0   ;;  %s1135_s18 = smov 0  }
   0x6 LB: > { %s152_s21 = sshll.u32 %s1346_s1, 4  ;;  %s1153_s22 = sadd.s32 4294967295, %s1088_s18   ;;  %s1088_s18 = sphi %s1135_s18, %s1360_s18   ;;  %s1084_s17 = sphi %s1133_s17, %s1359_s17   ;;  %s1080_s16 = sphi %s1131_s16, %s1358_s16   ;;  %s1076_s15 = sphi %s1129_s15, %s1357_s15   ;;  %s153_s21 = int_to_ptr.hbm [resolvable:$true] %s152_s21 }
   0x7   : > { %p746_p0 = scmp.ge.s32.totalorder %s1088_s18, 1  ;;  %p42_p1 = scmp.eq.s32.totalorder %s1153_s22, 0 }
   0x8   : > { %p141_p2 = scmp.lt.s32.totalorder %s1088_s18, 3  ;;  %s1090_s24 = smov [#allocation5]  }
   0x9   : > { %s154_s25 = sshll.u32 %s1090_s24, 4  ;;  %s166_s28 = sshll.u32 %s1347_s2, 4  ;;  %s155_s25 = int_to_ptr.vmem [resolvable:$true] %s154_s25  ;;  %s167_s28 = int_to_ptr.hbm [resolvable:$true] %s166_s28 }
   0xa   : > { %p1158_p3 = pnand %p746_p0, %p141_p2  ;;  %s1091_s29 = smov [#allocation7]  }
   0xb   : > { %s168_s30 = sshll.u32 %s1091_s29, 4  ;;  %s1092_s5 = smov 128   ;;  %s169_s30 = int_to_ptr.vmem [resolvable:$true] %s168_s30 }
   0xc   : > { %p844_p4 = pneg %p1158_p3  ;;  %s1093_s6 = smov 8  }
   0xd   : > { %s1094_s7 = smov 64   ;;  %s1095_s8 = smov 4  }
   0xe   : > { %p845_p6 = pnand %p844_p4, %p42_p1  ;;  %s745_s9 = sadd.s32 4294967294, %s1088_s18  }
   0xf   : > { %s1172_s10 = sadd.s32 1, %s1088_s18   ;;  %s28_s12 = sadd.s32 1, %s1084_s17 }
  0x10   : > { %847 = dma.hbm_to_vmem [thread:$0]  (!%p845_p6), %s153_s21, 1024, %s155_s25, [#allocation6], %s1092_s5, %s1092_s5, %s1093_s6  }
  0x11   : > { %850 = dma.hbm_to_vmem [thread:$0]  (!%p845_p6), %s167_s28, 512, %s169_s30, [#allocation6], %s1094_s7, %s1094_s7, %s1095_s8  }
  0x12   : > { %s25_s11 = ssub.s32 %s1088_s18, %s1172_s10  ;;  %p35_p8 = scmp.ne.s32.totalorder %s1084_s17, %s1080_s16 }
  0x13   : > { %p26_p7 = scmp.eq.s32.totalorder %s25_s11, 0  ;;  %p36_p9 = scmp.eq.s32.totalorder %s1088_s18, 0 }
  0x14   : > { %p41_p10 = scmp.ne.s32.totalorder %s1080_s16, %s1076_s15  ;;  %p128_p13 = scmp.eq.s32.totalorder %s1153_s22, 1 }
  0x15   : > { %s1183_s13 = scalar_select %p26_p7, %s1084_s17, %s28_s12  }
  0x16   : > { %p1185_p11 = por %p36_p9, %p35_p8  ;;  %p1191_p12 = por %p42_p1, %p41_p10 }
  0x17   : > { %p134_p0 = scmp.eq.s32.totalorder %s745_s9, 1  ;;  %p861_p2 = scmp.lt.s32.totalorder %s1088_s18, 2 }
  0x18   : > { %s185_s20 = sand.u32 1, %s1084_s17   ;;  %p1198_p4 = por %p128_p13, %p35_p8 }
  0x19   : > { %p1202_p6 = por %p134_p0, %p41_p10  ;;  %s750_s25 = sshll.u32 %s185_s20, 2 }
  0x1a   : > { %s751_s26 = sshll.u32 %s1088_s18, 2  ;;  %s189_s30 = scalar_lea.vmem [#allocation2], %s750_s25 }
  0x1b   : > { %s193_s29 = scalar_lea.hbm %s1345_s0, %s751_s26  ;;  %s197_s5 = sshll.u32 %s189_s30, 4  ;;  %s198_s5 = int_to_ptr.vmem [resolvable:$true] %s197_s5 }
  0x1c   : > { %s195_s6 = sshll.u32 %s193_s29, 4  ;;  %p1212_p7 = pnand %p861_p2, %p1185_p11  ;;  %s196_s6 = int_to_ptr.hbm [resolvable:$true] %s195_s6 }
  0x1d   : > { %s186_s8 = scalar_lea.sflag [#allocation3], %s185_s20  ;;  %s988_s9 = sshra.s32 %s196_s6, 4  ;;  %s989_s9 = int_to_ptr.hbm [resolvable:$true] %s988_s9 }
  0x1e   : > { %s990_s11 = scalar_lea.hbm %s989_s9, 4  ;;  %p992_p9 = pneg %p1212_p7 }
  0x1f   : > { %p991_p8 = scmp.ne.s32.totalorder %s989_s9, %s990_s11  ;;  %s995_s26 = scalar_lea.hbm %s1345_s0, 8 }
  0x20   : > { %p996_p11 = scmp.lt.s32.totalorder %s989_s9, %s1345_s0  ;;  %p997_p0 = scmp.lt.s32.totalorder %s995_s26, %s990_s11 }
  0x21   : > { %p993_p10 = pnand %p992_p9, %p991_p8 }
  0x22   : > { %p998_p2 = por %p997_p0, %p996_p11 }
  0x23   : > { %p994_p13 = pneg %p993_p10 }
  0x25   : > { %p999_p5 = pnand %p998_p2, %p994_p13 }
  0x27   : > { %1002 = shalt.err (!%p999_p5)
}
  0x28   : > { %854 = dma.hbm_to_vmem [thread:$0]  (!%p1212_p7), %s196_s6, 64, %s198_s5, %s186_s8  }
  0x29   : > { %206 = sbr.rel (%p1158_p3) target bundleno = 1540 (0x604), region = 36  ;;  %s1229_s20 = sand.u32 (!%p1158_p3), 1, %s1080_s16  }
  0x2a   : > { %s753_s28 = sshll.u32 (!%p1158_p3), %s1229_s20, 2  ;;  %s209_s29 = scalar_lea.sflag (!%p1158_p3), [#allocation3], %s1229_s20 }
  0x2b   : > { %s212_s30 = scalar_lea.vmem (!%p1158_p3), [#allocation2], %s753_s28 }
  0x2e   : > { %1063 = dma.done.wait (%p1191_p12), %s209_s29, 64  }
  0x2f   : > { %1065 = vsyncadd (%p1191_p12), %s209_s29, 4294967232 }
  0x30   : > { %1067 = dma.done.wait (%p42_p1), [#allocation6], 1536  }
  0x31   : > { %1069 = vsyncadd (%p42_p1), [#allocation6], 4294965760  ;;  %v783_v0 = vld [vmem:[#allocation5 + $0x30] sm:$0xf]  ;;  %v827_v1 = vld [vmem:[#allocation5 + $0x34] sm:$0xf0]  ;;  %v328_v33 = vlaneseq }
  0x32   : > { %v775_v2 = vld [vmem:[#allocation5 + $0x20] sm:$0xf]  ;;  %v784_v3 = vor.u32 %v827_v1, %v783_v0  ;;  %v825_v4 = vld [vmem:[#allocation5 + $0x24] sm:$0xf0]  ;;  %v767_v6 = vld [vmem:[#allocation5 + $0x10] sm:$0xf] }
  0x33   : > { %v776_v5 = vor.u32 %v825_v4, %v775_v2  ;;  %v823_v7 = vld [vmem:[#allocation5 + $0x14] sm:$0xf0]  ;;  %v759_v9 = vld [vmem:[#allocation5] sm:$0xf]  ;;  %v821_v10 = vld [vmem:[#allocation5 + $0x4] sm:$0xf0] }
  0x34   : > { %306 = vmatpush.bf16.msra.mxu0 %v784_v3  ;;  %v768_v8 = vor.u32 %v823_v7, %v767_v6  ;;  %v760_v11 = vor.u32 %v821_v10, %v759_v9  ;;  %v1241_v12 = vld [vmem:[%s212_s30] sm:$0xf]  ;;  %vm298_vm0 = vcmask 523264   ;;  %s1096_s23 = smov 112   ;;  %s1097_s19 = smov 64   ;;  %vm339_vm1 = vcmask 130048  }
  0x35   : > { %s1098_s5 = smov 16   ;;  %s1099_s6 = smov 80   ;;  %v826_v24 = vld [vmem:[#allocation5 + $0x34] sm:$0xf]  ;;  %v785_v25 = vld [vmem:[#allocation5 + $0x38] sm:$0xf0] }
  0x36   : > { %s1100_s7 = smov 32   ;;  %s1101_s8 = smov 96   ;;  %v824_v26 = vld [vmem:[#allocation5 + $0x24] sm:$0xf]  ;;  %v788_v27 = vor.u32 %v826_v24, %v785_v25  ;;  %v777_v28 = vld [vmem:[#allocation5 + $0x28] sm:$0xf0] }
  0x37   : > { %v780_v29 = vor.u32 %v824_v26, %v777_v28  ;;  %v822_v30 = vld [vmem:[#allocation5 + $0x14] sm:$0xf]  ;;  %v769_v31 = vld [vmem:[#allocation5 + $0x18] sm:$0xf0]  ;;  %v329_v35 = vshrl.u32 %v328_v33, 7  ;;  %v331_v36 = vand.u32 127, %v328_v33 }
  0x38   : > { %307 = vmatpush.bf16.msra.mxu0 %v776_v5  ;;  %319 = vmatpush.bf16.msra.mxu1 %v788_v27  ;;  %v772_v32 = vor.u32 %v822_v30, %v769_v31  ;;  %v1102_v40 = vmov -1e+30   ;;  %vm361_vm3 = vcmask 64512   ;;  %v820_v48 = vld [vmem:[#allocation5 + $0x4] sm:$0xf]  ;;  %s1103_s9 = smov 48  }
  0x39   : > { %vm332_vm2 = vcmp.ge.s32.totalorder %v329_v35, %v331_v36  ;;  %v761_v49 = vld [vmem:[#allocation5 + $0x8] sm:$0xf0]  ;;  %vm377_vm4 = vcmask 1043456   ;;  %vm582_vm5 = vcmask 261120   ;;  %vm584_vm6 = vcmask 392192   ;;  %s817_s11 = sshll.u32 %s1153_s22, 3 }
  0x3a   : > { %v333_v41 = vsel %vm332_vm2, 0.0, %v1102_v40  ;;  %v764_v50 = vor.u32 %v820_v48, %v761_v49  ;;  %s756_s12 = sshll.u32 %s1229_s20, 3  ;;  %s651_s27 = scalar_lea.hbm %s1349_s4, %s817_s11 }
  0x3b   : > { %s247_s29 = scalar_lea.vmem [#allocation8], %s756_s12  ;;  %s641_s22 = scalar_lea.sflag [#allocation4], %s1229_s20 }
  0x3c   : > { %308 = vmatpush.bf16.msra.mxu0 %v768_v8  ;;  %320 = vmatpush.bf16.msra.mxu1 %v780_v29  ;;  %s653_s30 = sshll.u32 %s247_s29, 4  ;;  %s654_s30 = int_to_ptr.vmem [resolvable:$true] %s653_s30 }
  0x40   : > { %309 = vmatpush.bf16.msra.mxu0 %v760_v11  ;;  %321 = vmatpush.bf16.msra.mxu1 %v772_v32 }
  0x43   : > { %789 = vmatmul.msk.bf16.vlgmr.msra.gmra.mxu0 %vm298_vm0, %v1241_v12 }
  0x44   : > { %322 = vmatpush.bf16.msra.mxu1 %v764_v50 }
  0x47   : > { %790 = vmatmul.msk.bf16.vlgmr.msra.gmra.mxu1 %vm298_vm0, %v1241_v12 }
  0xc0   : > { %v311_v13 = vpop.f32.mrf.mxu0 }
  0xc1   : > { %v1245_v14 = vpack.c.bf16 %v311_v13, %v311_v13 }
  0xc3   : > { %394 = vrot.lane.b32.xlu2 %v1245_v14, %s1096_s23  ;;  %337 = vrot.lane.b32.xlu0 %v1245_v14, %s1097_s19 }
  0xc4   : > { %v324_v56 = vpop.f32.mrf.mxu1 }
  0xc5   : > { %v335_v57 = vpack.c.bf16 %v324_v56, %v324_v56  ;;  %v829_v56 = vld [vmem:[#allocation7 + $0x8] sm:$0xff] }
  0xc7   : > { %v379_v58 = vsel %vm377_vm4, %v335_v57, 0 }
  0xc8   : > { %v313_v15 = vpop.f32.mrf.mxu0  ;;  %388 = vmatpush.bf16.msra.mxu3 %v379_v58 }
  0xcb   : > { %513 = vrot.lane.b32.xlu2 %v1245_v14, %s1098_s5 }
  0xcc   : > { %v326_v59 = vpop.f32.mrf.mxu1 }
  0xd3   : > { %511 = vrot.lane.b32.xlu2 %v1245_v14, %s1099_s6 }
  0xdb   : > { %455 = vrot.lane.b32.xlu2 %v1245_v14, %s1100_s7 }
  0xe3   : > { %453 = vrot.lane.b32.xlu2 %v1245_v14, %s1101_s8 }
 0x11d   : > { %v1258_v16 = vpop.permute.xlu2 %394 }
 0x125   : > { %v1260_v17 = vpop.permute.xlu2 %513 }
 0x126   : > { %v519_v2 = vsel %vm339_vm1, %v1260_v17, 0 }
 0x12d   : > { %v1262_v18 = vpop.permute.xlu2 %511 }
 0x135   : > { %v456_v19 = vpop.permute.xlu2 %455  ;;  %v338_v20 = vpop.permute.xlu0 %337 }
 0x136   : > { %v344_v21 = vsel %vm339_vm1, %v338_v20, 0  ;;  %v461_v22 = vsel %vm339_vm1, %v456_v19, 0 }
 0x137   : > { %353 = vmatpush.bf16.xpose.msra.mxu2 %v344_v21  ;;  %470 = vmatpush.bf16.xpose.msrb.mxu0 %v461_v22 }
 0x13d   : > { %v454_v23 = vpop.permute.xlu2 %453 }
 0x13e   : > { %791 = vmatmul.msk.bf16.vlgmr.msra.gmra.mxu2 %vm339_vm1, %v1245_v14  ;;  %795 = vmatmul.msk.bf16.vlgmr.msrb.gmra.mxu0 %vm339_vm1, %v454_v23 }
 0x1bb   : > { %v472_v34 = vpop.f32.mrf.mxu0 }
 0x1bc   : > { %v476_v43 = vmul.f32 0.125, %v472_v34 }
 0x1be   : > { %v477_v46 = vadd.f32 %v476_v43, %v333_v41 }
 0x1c0   : > { %v478_v47 = vsel %vm361_vm3, %v477_v46, -inf }
 0x1c1   : > { %v355_v37 = vpop.f32.mrf.mxu2 }
 0x1c2   : > { %v359_v38 = vmul.f32 0.125, %v355_v37 }
 0x1c3   : > { %v474_v39 = vpop.f32.mrf.mxu0 }
 0x1c4   : > { %v360_v42 = vadd.f32 %v359_v38, %v333_v41 }
 0x1c6   : > { %v362_v44 = vsel %vm361_vm3, %v360_v42, -inf }
 0x1c7   : > { %363 = vmax.xlane.f32.xlu0 %v362_v44 }
 0x1c9   : > { %v357_v45 = vpop.f32.mrf.mxu2 }
 0x1cf   : > { %479 = vmax.xlane.f32.xlu0 %v478_v47 }
 0x1e3   : > { %432 = vrot.lane.b32.xlu0 %v335_v57, %s1096_s23  ;;  %s655_s23 = sshll.u32 %s651_s27, 4  ;;  %s656_s23 = int_to_ptr.hbm [resolvable:$true] %s655_s23 }
 0x1e4   : > { %s1032_s19 = sshra.s32 %s656_s23, 4  ;;  %s1033_s19 = int_to_ptr.hbm [resolvable:$true] %s1032_s19 }
 0x1e5   : > { %p1039_p12 = scmp.lt.s32.totalorder %s1033_s19, %s1349_s4 }
 0x23a   : > { %v364_v51 = vpop.xlane.xlu0 %363 }
 0x23b   : > { %v365_v52 = vsub.f32 %v360_v42, %v364_v51 }
 0x23d   : > { %v366_v53 = vmul.f32 1.442695, %v365_v52 }
 0x23f   : > { %912 = vpow2.f32 %v366_v53 }
 0x242   : > { %v480_v3 = vpop.xlane.xlu0 %479 }
 0x243   : > { %v481_v13 = vsub.f32 %v477_v46, %v480_v3 }
 0x245   : > { %v913_v54 = vpop.eup %912 }
 0x246   : > { %v368_v55 = vsel %vm361_vm3, %v913_v54, 0.0 }
 0x247   : > { %369 = vadd.xlane.f32.xlu1 %v368_v55  ;;  %v830_v55 = vld [vmem:[#allocation7 + $0x10] sm:$0xff] }
 0x255   : > { %v433_v4 = vpop.permute.xlu0 %432 }
 0x256   : > { %v438_v5 = vsel %vm377_vm4, %v433_v4, 0 }
 0x257   : > { %447 = vmatpush.bf16.msrb.mxu2 %v438_v5 }
 0x260   : > { %396 = vrot.lane.b32.xlu1 %v1245_v14, %s1103_s9  ;;  %v482_v14 = vmul.f32 1.442695, %v481_v13 }
 0x2ba   : > { %v370_v60 = vpop.xlane.xlu1 %369 }
 0x2bb   : > { %914 = vrcp.f32 %v370_v60 }
 0x2bc   : > { %916 = vpow2.f32 %v482_v14 }
 0x2c1   : > { %v915_v61 = vpop.eup %914 }
 0x2c2   : > { %v372_v62 = vmul.f32 %v915_v61, %v913_v54  ;;  %v917_v20 = vpop.eup %916  ;;  %v831_v54 = vld [vmem:[#allocation7 + $0x18] sm:$0xff] }
 0x2c3   : > { %v484_v21 = vsel %vm361_vm3, %v917_v20, 0.0  ;;  %630 = vmatpush.bf16.msra.mxu0 %v831_v54 }
 0x2c4   : > { %v373_v63 = vpack.c.bf16 %v372_v62, %v372_v62 }
 0x2c6   : > { %792 = vmatmul.msk.bf16.vlgmr.msra.gmra.mxu3 %vm361_vm3, %v373_v63 }
 0x2c7   : > { %631 = vmatpush.bf16.msra.mxu0 %v830_v55 }
 0x2cb   : > { %632 = vmatpush.bf16.msra.mxu0 %v829_v56 }
 0x2d2   : > { %v397_v0 = vpop.permute.xlu1 %396 }
 0x2d3   : > { %v402_v1 = vsel %vm339_vm1, %v397_v0, 0 }
 0x2d4   : > { %411 = vmatpush.bf16.xpose.msrb.mxu3 %v402_v1  ;;  %v911_v1 = vld [vmem:[%s1348_s3] ss:$0 sm:$0xff] }
 0x2db   : > { %793 = vmatmul.msk.bf16.vlgmr.msrb.gmra.mxu3 %vm339_vm1, %v1258_v16 }
 0x2dc   : > { %528 = vmatpush.bf16.xpose.msra.mxu3 %v519_v2 }
 0x2eb   : > { %797 = vmatmul.msk.bf16.vlgmr.msra.gmra.mxu3 %vm339_vm1, %v1262_v18 }
 0x349   : > { %v1287_v6 = vpop.f32.mrf.mxu3 }
 0x351   : > { %v392_v7 = vpop.f32.mrf.mxu3 }
 0x35e   : > { %v413_v8 = vpop.f32.mrf.mxu3 }
 0x35f   : > { %v417_v9 = vmul.f32 0.125, %v413_v8 }
 0x361   : > { %v418_v10 = vadd.f32 %v417_v9, %v333_v41 }
 0x363   : > { %v419_v11 = vsel %vm361_vm3, %v418_v10, -inf }
 0x364   : > { %420 = vmax.xlane.f32.xlu1 %v419_v11 }
 0x366   : > { %v415_v12 = vpop.f32.mrf.mxu3 }
 0x36e   : > { %v530_v15 = vpop.f32.mrf.mxu3 }
 0x36f   : > { %v534_v16 = vmul.f32 0.125, %v530_v15 }
 0x371   : > { %v535_v17 = vadd.f32 %v534_v16, %v333_v41 }
 0x373   : > { %v536_v18 = vsel %vm361_vm3, %v535_v17, -inf }
 0x374   : > { %537 = vmax.xlane.f32.xlu2 %v536_v18 }
 0x376   : > { %v532_v19 = vpop.f32.mrf.mxu3 }
 0x37c   : > { %485 = vadd.xlane.f32.xlu2 %v484_v21 }
 0x3d7   : > { %v421_v22 = vpop.xlane.xlu1 %420 }
 0x3d8   : > { %v422_v23 = vsub.f32 %v418_v10, %v421_v22 }
 0x3da   : > { %v423_v24 = vmul.f32 1.442695, %v422_v23 }
 0x3dc   : > { %918 = vpow2.f32 %v423_v24 }
 0x3e2   : > { %v919_v25 = vpop.eup %918 }
 0x3e3   : > { %v425_v26 = vsel %vm361_vm3, %v919_v25, 0.0 }
 0x3e4   : > { %426 = vadd.xlane.f32.xlu0 %v425_v26 }
 0x3e7   : > { %v538_v27 = vpop.xlane.xlu2 %537 }
 0x3e8   : > { %v539_v28 = vsub.f32 %v535_v17, %v538_v27 }
 0x3ea   : > { %v540_v29 = vmul.f32 1.442695, %v539_v28 }
 0x3ec   : > { %920 = vpow2.f32 %v540_v29 }
 0x3ef   : > { %v486_v33 = vpop.xlane.xlu2 %485 }
 0x3f2   : > { %v921_v30 = vpop.eup %920 }
 0x3f3   : > { %v542_v31 = vsel %vm361_vm3, %v921_v30, 0.0 }
 0x3f4   : > { %543 = vadd.xlane.f32.xlu1 %v542_v31 }
 0x3f8   : > { %490 = vrot.lane.b32.xlu0 %v335_v57, %s1101_s8  ;;  %s1038_s8 = scalar_lea.hbm %s1349_s4, 16 }
 0x40d   : > { %548 = vrot.lane.b32.xlu1 %v335_v57, %s1099_s6  ;;  %v828_v57 = vld [vmem:[#allocation7] sm:$0xff] }
 0x40e   : > { %633 = vmatpush.bf16.msra.mxu0 %v828_v57 }
 0x457   : > { %v427_v32 = vpop.xlane.xlu0 %426 }
 0x458   : > { %922 = vrcp.f32 %v427_v32 }
 0x459   : > { %924 = vrcp.f32 %v486_v33 }
 0x45e   : > { %v923_v34 = vpop.eup %922 }
 0x45f   : > { %v429_v35 = vmul.f32 %v923_v34, %v919_v25  ;;  %v925_v37 = vpop.eup %924 }
 0x460   : > { %v488_v38 = vmul.f32 %v925_v37, %v917_v20 }
 0x461   : > { %v430_v36 = vpack.c.bf16 %v429_v35, %v429_v35 }
 0x462   : > { %v489_v41 = vpack.c.bf16 %v488_v38, %v488_v38 }
 0x463   : > { %794 = vmatmul.msk.bf16.vlgmr.msrb.gmra.mxu2 %vm361_vm3, %v430_v36 }
 0x467   : > { %v544_v42 = vpop.xlane.xlu1 %543 }
 0x468   : > { %926 = vrcp.f32 %v544_v42 }
 0x46a   : > { %v491_v39 = vpop.permute.xlu0 %490 }
 0x46b   : > { %v496_v40 = vsel %vm377_vm4, %v491_v39, 0 }
 0x46c   : > { %505 = vmatpush.bf16.msrb.mxu1 %v496_v40 }
 0x46e   : > { %v927_v43 = vpop.eup %926 }
 0x46f   : > { %796 = vmatmul.msk.bf16.vlgmr.msrb.gmra.mxu1 %vm361_vm3, %v489_v41  ;;  %v546_v44 = vmul.f32 %v927_v43, %v921_v30 }
 0x471   : > { %v547_v47 = vpack.c.bf16 %v546_v44, %v546_v44 }
 0x47f   : > { %v549_v45 = vpop.permute.xlu1 %548 }
 0x480   : > { %v554_v46 = vsel %vm377_vm4, %v549_v45, 0 }
 0x481   : > { %563 = vmatpush.bf16.msra.mxu2 %v554_v46 }
 0x484   : > { %798 = vmatmul.msk.bf16.vlgmr.msra.gmra.mxu2 %vm361_vm3, %v547_v47 }
 0x4e6   : > { %v449_v48 = vpop.f32.mrf.mxu2 }
 0x4e7   : > { %570 = vrot.lane.b32.xlu2 %v449_v48, %s1098_s5  ;;  %s1034_s5 = scalar_lea.hbm %s1033_s19, 8 }
 0x4e8   : > { %p1035_p1 = scmp.ne.s32.totalorder %s1033_s19, %s1034_s5  ;;  %p1040_p7 = scmp.lt.s32.totalorder %s1038_s8, %s1034_s5 }
 0x4ea   : > { %p1036_p3 = pnand %p1035_p1, %p1198_p4  ;;  %p1041_p8 = por %p1040_p7, %p1039_p12 }
 0x4ec   : > { %v507_v49 = vpop.f32.mrf.mxu1  ;;  %p1037_p5 = pneg %p1036_p3 }
 0x4ed   : > { %574 = vrot.lane.b32.xlu0 %v507_v49, %s1100_s7 }
 0x4ee   : > { %v451_v50 = vpop.f32.mrf.mxu2  ;;  %p1042_p9 = pnand %p1041_p8, %p1037_p5 }
 0x4f4   : > { %v509_v51 = vpop.f32.mrf.mxu1 }
 0x507   : > { %v565_v52 = vpop.f32.mrf.mxu2 }
 0x508   : > { %578 = vrot.lane.b32.xlu0 %v565_v52, %s1103_s9 }
 0x50f   : > { %v567_v53 = vpop.f32.mrf.mxu2 }
 0x541   : > { %v571_v59 = vpop.permute.xlu2 %570 }
 0x542   : > { %v581_v60 = vsel %vm339_vm1, %v1287_v6, %v571_v59 }
 0x55f   : > { %v575_v58 = vpop.permute.xlu0 %574 }
 0x560   : > { %v583_v61 = vsel %vm582_vm5, %v581_v60, %v575_v58 }
 0x57a   : > { %v579_v62 = vpop.permute.xlu0 %578 }
 0x57b   : > { %v585_v63 = vsel %vm584_vm6, %v583_v61, %v579_v62 }
 0x57c   : > { %v586_v0 = vpack.c.bf16 %v585_v63, %v585_v63 }
 0x57e   : > { %815 = vmatmul.msk.bf16.vlgmr.msra.gmra.mxu0 %vm298_vm0, %v586_v0 }
 0x5fb   : > { %v635_v2 = vpop.f32.mrf.mxu0 }
 0x5fc   : > { %v636_v3 = vadd.f32 %v911_v1, %v635_v2 }
 0x5fe   : > { %639 = vst.msk [vmem:[%s247_s29] sm:$0xff] %vm298_vm0, %v636_v3 }
 0x5ff   : > { %1045 = shalt.err (!%p1042_p9)
}
 0x600   : > { %842 = dma.vmem_to_hbm [thread:$0]  (%p1198_p4), %s654_s30, 128, %s656_s23, %s641_s22  }
 0x603   : > { %v637_v4 = vpop.f32.mrf.mxu0 }
 0x604 PF: > { %s667_s20 = sand.u32 1, %s1076_s15   ;;  %p1356_p10 = scmp.ge.s32.totalorder %s1088_s18, 2 }
 0x605   : > { %s668_s12 = scalar_lea.sflag [#allocation4], %s667_s20 }
 0x606   : > { %p856_p13 = pnand %p1356_p10, %p1202_p6 }
 0x608   : > { %p857_p11 = pneg %p856_p13 }
 0x60a   : > { %1071 = dma.done.wait (%p857_p11), %s668_s12, 128  }
 0x60b   : > { %1073 = vsyncadd (%p857_p11), %s668_s12, 4294967168  ;;  %p18_p0 = scmp.ge.s32.totalorder %s1172_s10, 4   ;;  %s1357_s15 = smov %s1080_s16 }
 0x60c   : > { %s1358_s16 = smov %s1084_s17  ;;  %s1359_s17 = smov %s1183_s13 }
 0x60d   : > { %s1360_s18 = smov %s1172_s10  ;;  %20 = sbr.rel (!%p18_p0) target bundleno = 6 (0x6), region = 89 }
 0x612   :  { %674 = vsyncpa [#allocation3], 1 }
 0x613   :  { %676 = vsyncpa [#allocation3 + $0x1], 1 }
 0x614   :  { %677 = vsyncpa [#allocation6], 1 }
 0x615   :  { %678 = vsyncpa [#allocation4], 1 }
 0x616   :  { %680 = vsyncpa [#allocation4 + $0x1], 1 }

</bundles_post_ra>
